<compile_context>
chip_gen: v6e
topology: v6e:2x2x1
jax: 0.10.0
libtpu: 0.0.40
codegen_flags: <defaults>
</compile_context>

<pallas_src>
import functools

import jax
import jax.numpy as jnp
from jax.experimental import pallas as pl
from jax.experimental.pallas import tpu as pltpu


def _round_up(x, m):
    return (x + m - 1) // m * m


# ---------------------------------------------------------------------------
# Pallas kernel: fused  out = GELU(x @ W1 + b1) @ W2 + b2   (exact erf GELU,
# matching torch nn.GELU() default).  Tiled over (rows, d_out, d_mid).
# ---------------------------------------------------------------------------
def _mlp_kernel(x_ref, w1_ref, b1_ref, w2_ref, b2_ref, o_ref,
                acc_ref, h_ref, *, compute_dtype):
    j = pl.program_id(1)          # d_out tile index
    k = pl.program_id(2)          # d_mid (reduction) tile index
    nk = pl.num_programs(2)

    # init accumulator at the start of every (row tile, out tile) reduction
    @pl.when(k == 0)
    def _init():
        acc_ref[...] = jnp.zeros_like(acc_ref)

    # First matmul + GELU only for the first output-column tile; cache the
    # (tm, tk) slab of h in VMEM scratch and reuse it for the remaining
    # output tiles of this row tile (j axis is "arbitrary", so this is safe).
    @pl.when(j == 0)
    def _compute_h():
        x = x_ref[...].astype(compute_dtype)
        w1 = w1_ref[...].astype(compute_dtype)
        h = jnp.dot(x, w1, preferred_element_type=jnp.float32) + b1_ref[...]
        # exact (erf-based) GELU, same as torch.nn.GELU()
        h = 0.5 * h * (1.0 + jax.lax.erf(h * jnp.float32(0.7071067811865476)))
        h_ref[k] = h

    h_k = h_ref[k].astype(compute_dtype)
    acc_ref[...] += jnp.dot(h_k, w2_ref[...].astype(compute_dtype),
                            preferred_element_type=jnp.float32)

    # finalize: add output bias and write the lane-dense output tile
    @pl.when(k == nk - 1)
    def _finalize():
        o_ref[...] = (acc_ref[...] + b2_ref[...]).astype(o_ref.dtype)


def mlp_pallas(x2d, w1, b1, w2, b2, *, compute_dtype=jnp.float32,
               row_tile=512, mid_tile=512, out_tile=512):
    """x2d: [M, D_in]; w1: [D_in, D_mid]; b1: [1, D_mid];
       w2: [D_mid, D_out]; b2: [1, D_out]  ->  [M, D_out]

    compute_dtype=jnp.bfloat16 can be used on v6e/v7x for ~2-4x MXU throughput
    (accumulation stays f32); default f32 for exact numerics.
    """
    m, d_in = x2d.shape
    d_mid = w1.shape[1]
    d_out = w2.shape[1]

    # ---- tile sizes --------------------------------------------------------
    # d_mid / d_out tiles: multiples of 128 lanes (lane-dense stores / MXU N).
    tk = min(mid_tile, _round_up(d_mid, 128))
    tn = min(out_tile, _round_up(d_out, 128))
    # row tile: as large as possible; when M is big keep >=2 row tiles so both
    # TensorCores get work on v7x (row axis is the "parallel" one).
    if m >= 256:
        tm = max(128, min(row_tile, _round_up(pl.cdiv(m, 2), 8)))
    else:
        tm = _round_up(max(m, 1), 8)

    # ---- VMEM budget (sized for v7x: 64 MiB physical, ~48 MiB usable) ------
    VMEM_BUDGET = 44 * 1024 * 1024

    def est_bytes(tm_, tk_, tn_):
        d_mid_pad_ = _round_up(d_mid, tk_)
        io = (tm_ * d_in + d_in * tk_ + tk_ + tk_ * tn_ + tn_ + tm_ * tn_)
        scratch = tm_ * tn_ + tm_ * d_mid_pad_          # acc + h cache
        return 4 * (2 * io + scratch)                   # double-buffered I/O

    while est_bytes(tm, tk, tn) > VMEM_BUDGET and tm > 128:
        tm = max(128, _round_up(tm // 2, 8))
    while est_bytes(tm, tk, tn) > VMEM_BUDGET and tk > 128:
        tk = max(128, (tk // 2) // 128 * 128)
    while est_bytes(tm, tk, tn) > VMEM_BUDGET and tn > 128:
        tn = max(128, (tn // 2) // 128 * 128)

    # ---- padding (zero-padding is exact: GELU(0)=0, 0 @ W2 = 0) ------------
    m_pad = _round_up(m, tm)
    d_mid_pad = _round_up(d_mid, tk)
    d_out_pad = _round_up(d_out, tn)
    nk = d_mid_pad // tk

    x_p = x2d if m_pad == m else jnp.pad(x2d, ((0, m_pad - m), (0, 0)))
    w1_p = w1 if d_mid_pad == d_mid else jnp.pad(w1, ((0, 0), (0, d_mid_pad - d_mid)))
    b1_p = b1 if d_mid_pad == d_mid else jnp.pad(b1, ((0, 0), (0, d_mid_pad - d_mid)))
    w2_p = w2
    if d_mid_pad != d_mid or d_out_pad != d_out:
        w2_p = jnp.pad(w2, ((0, d_mid_pad - d_mid), (0, d_out_pad - d_out)))
    b2_p = b2 if d_out_pad == d_out else jnp.pad(b2, ((0, 0), (0, d_out_pad - d_out)))

    grid = (m_pad // tm, d_out_pad // tn, nk)

    cost = pl.CostEstimate(
        flops=2 * m * (d_in * d_mid + d_mid * d_out),
        transcendentals=m * d_mid,
        bytes_accessed=4 * (m * d_in + d_in * d_mid + d_mid * d_out
                            + m * d_out + d_mid + d_out),
    )
    vmem_limit = int(min(64 * 2**20, max(32 * 2**20, 2 * est_bytes(tm, tk, tn))))

    out = pl.pallas_call(
        functools.partial(_mlp_kernel, compute_dtype=compute_dtype),
        out_shape=jax.ShapeDtypeStruct((m_pad, d_out_pad), x2d.dtype),
        grid_spec=pltpu.PrefetchScalarGridSpec(
            num_scalar_prefetch=0,
            grid=grid,
            in_specs=[
                pl.BlockSpec((tm, d_in), lambda i, j, k: (i, 0)),       # x rows
                pl.BlockSpec((d_in, tk), lambda i, j, k: (0, k)),       # W1 k-slab
                pl.BlockSpec((1, tk), lambda i, j, k: (0, k)),          # b1 k-slab
                pl.BlockSpec((tk, tn), lambda i, j, k: (k, j)),         # W2 tile
                pl.BlockSpec((1, tn), lambda i, j, k: (0, j)),          # b2 tile
            ],
            out_specs=pl.BlockSpec((tm, tn), lambda i, j, k: (i, j)),
            scratch_shapes=[
                pltpu.VMEM((tm, tn), jnp.float32),        # f32 accumulator
                pltpu.VMEM((nk, tm, tk), jnp.float32),    # cached GELU(x@W1+b1)
            ],
        ),
        compiler_params=pltpu.CompilerParams(
            # rows: parallel (megacore).  d_out must stay "arbitrary" because
            # the h-cache is filled on j==0 and reused for j>0 on the same core.
            dimension_semantics=("parallel", "arbitrary", "arbitrary"),
            vmem_limit_bytes=vmem_limit,
        ),
        cost_estimate=cost,
    )(x_p, w1_p, b1_p, w2_p, b2_p)

    return out[:m, :d_out]


# ---------------------------------------------------------------------------
# DualStateAdapter (JAX/Pallas version)
# ---------------------------------------------------------------------------
class DualStateAdapter:
    def __init__(self, hidden_dim, max_superposition_dim=4, key=None):
        self.hidden_dim = hidden_dim
        self.max_superposition_dim = max_superposition_dim
        if key is None:
            key = jax.random.PRNGKey(0)
        keys = jax.random.split(key, 8)
        H = hidden_dim
        S = max_superposition_dim

        def _init(k, fan_in, shape):
            bound = 1.0 / jnp.sqrt(fan_in)
            return jax.random.uniform(k, shape, jnp.float32, -bound, bound)

        # to_superposition: Linear(H, 2H) -> GELU -> Linear(2H, H*S)
        # weights stored as [in, out] (already transposed vs. torch [out, in])
        self.to_w1 = _init(keys[0], H, (H, 2 * H))
        self.to_b1 = _init(keys[1], H, (1, 2 * H))
        self.to_w2 = _init(keys[2], 2 * H, (2 * H, H * S))
        self.to_b2 = _init(keys[3], 2 * H, (1, H * S))

        # from_superposition: Linear(H*S, 2H) -> GELU -> Linear(2H, H)
        self.fr_w1 = _init(keys[4], H * S, (H * S, 2 * H))
        self.fr_b1 = _init(keys[5], H * S, (1, 2 * H))
        self.fr_w2 = _init(keys[6], 2 * H, (2 * H, H))
        self.fr_b2 = _init(keys[7], 2 * H, (1, H))

    def _apply_mlp(self, x, w1, b1, w2, b2):
        # glue: flatten leading dims, run the Pallas MLP, restore shape
        lead = x.shape[:-1]
        x2d = x.reshape((-1, x.shape[-1]))
        out = mlp_pallas(x2d, w1, b1, w2, b2)
        return out.reshape(lead + (out.shape[-1],))

    def to_superposition(self, x):
        return self._apply_mlp(x, self.to_w1, self.to_b1, self.to_w2, self.to_b2)

    def from_superposition(self, x):
        return self._apply_mlp(x, self.fr_w1, self.fr_b1, self.fr_w2, self.fr_b2)

    def prepare_superposition(self, inputs):
        if 'src_superposition' in inputs or 'tgt_superposition' in inputs:
            return inputs
        adapted = dict(inputs)
        has_src = 'src_emb' in inputs
        has_tgt = 'tgt_emb' in inputs
        if has_src and has_tgt:
            # fuse src & tgt into one pallas_call: weights are DMA'd once and
            # pipeline warm-up is paid once (near-2x on the to_superposition path)
            src, tgt = inputs['src_emb'], inputs['tgt_emb']
            s2 = src.reshape((-1, src.shape[-1]))
            t2 = tgt.reshape((-1, tgt.shape[-1]))
            both = jnp.concatenate([s2, t2], axis=0)
            out = mlp_pallas(both, self.to_w1, self.to_b1, self.to_w2, self.to_b2)
            n_src = s2.shape[0]
            d_out = out.shape[-1]
            adapted['src_superposition'] = out[:n_src].reshape(src.shape[:-1] + (d_out,))
            adapted['tgt_superposition'] = out[n_src:].reshape(tgt.shape[:-1] + (d_out,))
        elif has_src:
            adapted['src_superposition'] = self.to_superposition(inputs['src_emb'])
        elif has_tgt:
            adapted['tgt_superposition'] = self.to_superposition(inputs['tgt_emb'])
        return adapted

    def collapse_superposition(self, superposition_state):
        return self.from_superposition(superposition_state)

    def __call__(self, inputs, collapse_outputs=False):
        adapted = self.prepare_superposition(inputs)
        if collapse_outputs and 'superposition_state' in adapted:
            adapted['deterministic_state'] = self.collapse_superposition(
                adapted['superposition_state'])
        return adapted


# ---------------------------------------------------------------------------
# Reference (plain JAX) for a sanity check
# ---------------------------------------------------------------------------
def _ref_mlp(x, w1, b1, w2, b2):
    h = x @ w1 + b1
    h = 0.5 * h * (1.0 + jax.lax.erf(h / jnp.sqrt(2.0)))
    return h @ w2 + b2


if __name__ == "__main__":
    H = 32          # hidden_dim
    S = 4           # max_superposition_dim
    B, T = 2, 8     # batch, seq

    key = jax.random.PRNGKey(0)
    k_src, k_tgt, k_sup, k_par = jax.random.split(key, 4)

    src_emb = jax.random.normal(k_src, (B, T, H), jnp.float32)
    tgt_emb = jax.random.normal(k_tgt, (B, T, H), jnp.float32)
    superposition_state = jax.random.normal(k_sup, (B, T, H * S), jnp.float32)

    adapter = DualStateAdapter(H, S, key=k_par)

    inputs = {
        'src_emb': src_emb,
        'tgt_emb': tgt_emb,
        'superposition_state': superposition_state,
    }
    outputs = adapter(inputs, collapse_outputs=True)
    jax.block_until_ready(outputs)

    # correctness check against plain-JAX reference
    ref_src = _ref_mlp(src_emb.reshape(-1, H), adapter.to_w1, adapter.to_b1,
                       adapter.to_w2, adapter.to_b2).reshape(B, T, H * S)
    ref_tgt = _ref_mlp(tgt_emb.reshape(-1, H), adapter.to_w1, adapter.to_b1,
                       adapter.to_w2, adapter.to_b2).reshape(B, T, H * S)
    ref_det = _ref_mlp(superposition_state.reshape(-1, H * S), adapter.fr_w1,
                       adapter.fr_b1, adapter.fr_w2, adapter.fr_b2).reshape(B, T, H)

    assert outputs['src_superposition'].shape == (B, T, H * S)
    assert outputs['tgt_superposition'].shape == (B, T, H * S)
    assert outputs['deterministic_state'].shape == (B, T, H)
    assert jnp.allclose(outputs['src_superposition'], ref_src, atol=1e-4, rtol=1e-4)
    assert jnp.allclose(outputs['tgt_superposition'], ref_tgt, atol=1e-4, rtol=1e-4)
    assert jnp.allclose(outputs['deterministic_state'], ref_det, atol=1e-4, rtol=1e-4)

    print("KERNEL_OK")
</pallas_src>

<mosaic_0001>
module attributes {stable_mosaic.version = 11 : i64} {
  func.func @_mlp_kernel(%arg0: i32, %arg1: i32, %arg2: i32, %arg3: memref<32x32xf32, #tpu.memory_space<vmem>>, %arg4: memref<32x128xf32, #tpu.memory_space<vmem>>, %arg5: memref<1x128xf32, #tpu.memory_space<vmem>>, %arg6: memref<128x128xf32, #tpu.memory_space<vmem>>, %arg7: memref<1x128xf32, #tpu.memory_space<vmem>>, %arg8: memref<32x128xf32, #tpu.memory_space<vmem>>, %arg9: memref<32x128xf32, #tpu.memory_space<vmem>>, %arg10: memref<1x32x128xf32, #tpu.memory_space<vmem>>) attributes {dimension_semantics = [#tpu.dimension_semantics<parallel>, #tpu.dimension_semantics<arbitrary>, #tpu.dimension_semantics<arbitrary>], iteration_bounds = array<i64: 1, 1, 1>, scalar_prefetch = 0 : i64, scratch_operands = 2 : i64, tpu.core_type = #tpu.core_type<tc>, window_params = [{transform_indices = @transform_0, window_bounds = array<i64: 32, 32>}, {transform_indices = @transform_1, window_bounds = array<i64: 32, 128>}, {transform_indices = @transform_2, window_bounds = array<i64: 1, 128>}, {transform_indices = @transform_3, window_bounds = array<i64: 128, 128>}, {transform_indices = @transform_4, window_bounds = array<i64: 1, 128>}, {transform_indices = @transform_5, window_bounds = array<i64: 32, 128>}]} {
    %c0_i32 = arith.constant 0 : i32
    %0 = arith.cmpi eq, %arg2, %c0_i32 : i32
    %1 = arith.extui %0 : i1 to i32
    %c0_i32_0 = arith.constant 0 : i32
    %2 = arith.cmpi ne, %1, %c0_i32_0 : i32
    scf.if %2 {
      %cst_12 = arith.constant 0.000000e+00 : f32
      %17 = vector.broadcast %cst_12 : f32 to vector<32x128xf32>
      %c0_13 = arith.constant 0 : index
      %c0_14 = arith.constant 0 : index
      %18 = vector.load %arg9[%c0_13, %c0_14] : memref<32x128xf32, #tpu.memory_space<vmem>>, vector<32x128xf32>
      tpu.vector_store %arg9[%c0_13, %c0_14], %17 {strides = array<i32>} : memref<32x128xf32, #tpu.memory_space<vmem>>, vector<32x128xf32>,
    } else {
    }
    %c0_i32_1 = arith.constant 0 : i32
    %3 = arith.cmpi eq, %arg1, %c0_i32_1 : i32
    %4 = arith.extui %3 : i1 to i32
    %c0_i32_2 = arith.constant 0 : i32
    %5 = arith.cmpi ne, %4, %c0_i32_2 : i32
    scf.if %5 {
      %c0_12 = arith.constant 0 : index
      %c0_13 = arith.constant 0 : index
      %17 = vector.load %arg3[%c0_12, %c0_13] : memref<32x32xf32, #tpu.memory_space<vmem>>, vector<32x32xf32>
      %c0_14 = arith.constant 0 : index
      %c0_15 = arith.constant 0 : index
      %18 = vector.load %arg4[%c0_14, %c0_15] : memref<32x128xf32, #tpu.memory_space<vmem>>, vector<32x128xf32>
      %cst_16 = arith.constant dense<0.000000e+00> : vector<32x128xf32>
      %19 = tpu.matmul %17, %18, %cst_16 {dimension_numbers = #tpu.dot_dimension_numbers<[1], [0], [0], [1], [0, 0, 1, 1], [], []>} : vector<32x32xf32>, vector<32x128xf32>, vector<32x128xf32> -> vector<32x128xf32>
      %c0_17 = arith.constant 0 : index
      %c0_18 = arith.constant 0 : index
      %20 = vector.load %arg5[%c0_17, %c0_18] : memref<1x128xf32, #tpu.memory_space<vmem>>, vector<1x128xf32>
      %21 = vector.broadcast %20 : vector<1x128xf32> to vector<32x128xf32>
      %22 = arith.addf %19, %21 : vector<32x128xf32>
      %cst_19 = arith.constant 5.000000e-01 : f32
      %23 = vector.broadcast %cst_19 : f32 to vector<32x128xf32>
      %24 = arith.mulf %23, %22 : vector<32x128xf32>
      %cst_20 = arith.constant 0.707106769 : f32
      %25 = vector.broadcast %cst_20 : f32 to vector<32x128xf32>
      %26 = arith.mulf %22, %25 : vector<32x128xf32>
      %27 = math.erf %26 : vector<32x128xf32>
      %cst_21 = arith.constant 1.000000e+00 : f32
      %28 = vector.broadcast %cst_21 : f32 to vector<32x128xf32>
      %29 = arith.addf %28, %27 : vector<32x128xf32>
      %30 = arith.mulf %24, %29 : vector<32x128xf32>
      %31 = arith.index_cast %arg2 : i32 to index
      %c0_22 = arith.constant 0 : index
      %c0_23 = arith.constant 0 : index
      %32 = vector.load %arg10[%31, %c0_22, %c0_23] : memref<1x32x128xf32, #tpu.memory_space<vmem>>, vector<1x32x128xf32>
      %33 = vector.shape_cast %32 : vector<1x32x128xf32> to vector<32x128xf32>
      %34 = vector.shape_cast %30 : vector<32x128xf32> to vector<1x32x128xf32>
      tpu.vector_store %arg10[%31, %c0_22, %c0_23], %34 {strides = array<i32>} : memref<1x32x128xf32, #tpu.memory_space<vmem>>, vector<1x32x128xf32>,
    } else {
    }
    %6 = arith.index_cast %arg2 : i32 to index
    %c0 = arith.constant 0 : index
    %c0_3 = arith.constant 0 : index
    %7 = vector.load %arg10[%6, %c0, %c0_3] : memref<1x32x128xf32, #tpu.memory_space<vmem>>, vector<1x32x128xf32>
    %8 = vector.shape_cast %7 : vector<1x32x128xf32> to vector<32x128xf32>
    %c0_4 = arith.constant 0 : index
    %c0_5 = arith.constant 0 : index
    %9 = vector.load %arg9[%c0_4, %c0_5] : memref<32x128xf32, #tpu.memory_space<vmem>>, vector<32x128xf32>
    %c0_6 = arith.constant 0 : index
    %c0_7 = arith.constant 0 : index
    %10 = vector.load %arg6[%c0_6, %c0_7] : memref<128x128xf32, #tpu.memory_space<vmem>>, vector<128x128xf32>
    %cst = arith.constant dense<0.000000e+00> : vector<32x128xf32>
    %11 = tpu.matmul %8, %10, %cst {dimension_numbers = #tpu.dot_dimension_numbers<[1], [0], [0], [1], [0, 0, 1, 1], [], []>} : vector<32x128xf32>, vector<128x128xf32>, vector<32x128xf32> -> vector<32x128xf32>
    %12 = arith.addf %9, %11 : vector<32x128xf32>
    %c0_8 = arith.constant 0 : index
    %c0_9 = arith.constant 0 : index
    %13 = vector.load %arg9[%c0_8, %c0_9] : memref<32x128xf32, #tpu.memory_space<vmem>>, vector<32x128xf32>
    tpu.vector_store %arg9[%c0_8, %c0_9], %12 {strides = array<i32>} : memref<32x128xf32, #tpu.memory_space<vmem>>, vector<32x128xf32>,
    %c0_i32_10 = arith.constant 0 : i32
    %14 = arith.cmpi eq, %arg2, %c0_i32_10 : i32
    %15 = arith.extui %14 : i1 to i32
    %c0_i32_11 = arith.constant 0 : i32
    %16 = arith.cmpi ne, %15, %c0_i32_11 : i32
    scf.if %16 {
      %c0_12 = arith.constant 0 : index
      %c0_13 = arith.constant 0 : index
      %17 = vector.load %arg9[%c0_12, %c0_13] : memref<32x128xf32, #tpu.memory_space<vmem>>, vector<32x128xf32>
      %c0_14 = arith.constant 0 : index
      %c0_15 = arith.constant 0 : index
      %18 = vector.load %arg7[%c0_14, %c0_15] : memref<1x128xf32, #tpu.memory_space<vmem>>, vector<1x128xf32>
      %19 = vector.broadcast %18 : vector<1x128xf32> to vector<32x128xf32>
      %20 = arith.addf %17, %19 : vector<32x128xf32>
      %c0_16 = arith.constant 0 : index
      %c0_17 = arith.constant 0 : index
      %21 = vector.load %arg8[%c0_16, %c0_17] : memref<32x128xf32, #tpu.memory_space<vmem>>, vector<32x128xf32>
      tpu.vector_store %arg8[%c0_16, %c0_17], %20 {strides = array<i32>} : memref<32x128xf32, #tpu.memory_space<vmem>>, vector<32x128xf32>,
    } else {
    }
    return
  }
  func.func @transform_0(%arg0: i32, %arg1: i32, %arg2: i32) -> (i32, i32) {
    %c0_i32 = arith.constant 0 : i32
    %c0_i32_0 = arith.constant 0 : i32
    return %arg0, %c0_i32 : i32, i32
  }
  func.func @transform_1(%arg0: i32, %arg1: i32, %arg2: i32) -> (i32, i32) {
    %c0_i32 = arith.constant 0 : i32
    %c0_i32_0 = arith.constant 0 : i32
    return %c0_i32, %arg2 : i32, i32
  }
  func.func @transform_2(%arg0: i32, %arg1: i32, %arg2: i32) -> (i32, i32) {
    %c0_i32 = arith.constant 0 : i32
    %c0_i32_0 = arith.constant 0 : i32
    return %c0_i32, %arg2 : i32, i32
  }
  func.func @transform_3(%arg0: i32, %arg1: i32, %arg2: i32) -> (i32, i32) {
    %c0_i32 = arith.constant 0 : i32
    return %arg2, %arg1 : i32, i32
  }
  func.func @transform_4(%arg0: i32, %arg1: i32, %arg2: i32) -> (i32, i32) {
    %c0_i32 = arith.constant 0 : i32
    %c0_i32_0 = arith.constant 0 : i32
    return %c0_i32, %arg1 : i32, i32
  }
  func.func @transform_5(%arg0: i32, %arg1: i32, %arg2: i32) -> (i32, i32) {
    %c0_i32 = arith.constant 0 : i32
    return %arg0, %arg1 : i32, i32
  }
}

</mosaic_0001>

<bundles_post_ra>
// kernel: tpu_custom_call.1
= control target key start
LH: loop header
LB: loop body
LE: loop exit
PB: predicated region body
PF: predicated region fallthrough
CT: control target
= control target key end

     0   :  { %10 = vsyncpa [#allocation5], 0  ;;  %s628_s0 = inlined_call_operand.hbm [shape: f32[32,32], index: 0, kind: input, shape index: {}]   ;;  %s629_s1 = inlined_call_operand.hbm [shape: f32[32,128], index: 1, kind: input, shape index: {}]   ;;  %s630_s2 = inlined_call_operand.vmem [shape: f32[1,128], index: 2, kind: input, shape index: {}]   ;;  %s631_s3 = inlined_call_operand.hbm [shape: f32[128,128], index: 3, kind: input, shape index: {}]   ;;  %s632_s4 = inlined_call_operand.vmem [shape: f32[1,128], index: 4, kind: input, shape index: {}]   ;;  %s633_s5 = inlined_call_operand.hbm [shape: f32[32,128], index: 5, kind: output, shape index: {}]  }
   0x1   :  { %11 = vsyncpa [#allocation8], 0 }
   0x2   :  { %12 = vsyncpa [#allocation6], 0  ;;  %s558_s18 = smov [#allocation7]   ;;  %s559_s20 = smov [#allocation4]  }
   0x3   :  { %s30_s19 = sshll.u32 %s558_s18, 4  ;;  %s18_s21 = sshll.u32 %s559_s20, 4  ;;  %s31_s19 = int_to_ptr.vmem [resolvable:$true] %s30_s19  ;;  %s19_s21 = int_to_ptr.vmem [resolvable:$true] %s18_s21 }
   0x4   :  { %s480_s22 = scalar_lea.vmem %s31_s19, 512  ;;  %p485_p1 = scmp.lt.s32.totalorder %s31_s19, %s31_s19 }
   0x5   :  { %p481_p0 = scmp.ne.s32.totalorder %s31_s19, %s480_s22  ;;  %p486_p2 = scmp.lt.s32.totalorder %s480_s22, %s480_s22 }
   0x7   :  { %p487_p3 = por %p486_p2, %p485_p1 }
   0x9   :  { %p488_p4 = pnand %p487_p3, %p481_p0 }
   0xb   :  { %491 = shalt.err (!%p488_p4)
}
   0xc   :  { %s560_s23 = smov 128   ;;  %s561_s24 = smov 8  }
   0xd   :  { %36 = dma.hbm_to_vmem [thread:$0]  %s629_s1, 512, %s31_s19, [#allocation8], %s560_s23, %s560_s23, %s561_s24  }
   0xe   :  { %s500_s27 = scalar_lea.vmem %s19_s21, 512  ;;  %p505_p6 = scmp.lt.s32.totalorder %s19_s21, %s19_s21 }
   0xf   :  { %p501_p5 = scmp.ne.s32.totalorder %s19_s21, %s500_s27  ;;  %p506_p7 = scmp.lt.s32.totalorder %s500_s27, %s500_s27 }
  0x11   :  { %p507_p8 = por %p506_p7, %p505_p6 }
  0x13   :  { %p508_p9 = pnand %p507_p8, %p501_p5 }
  0x15   :  { %511 = shalt.err (!%p508_p9)
}
  0x16   :  { %24 = dma.hbm_to_vmem [thread:$0]  %s628_s0, 512, %s19_s21, [#allocation5], %s560_s23, %s560_s23, %s561_s24  }
  0x17   :  { %s562_s30 = smov [#allocation9]  }
  0x18   :  { %s44_s6 = sshll.u32 %s562_s30, 4  ;;  %s45_s6 = int_to_ptr.vmem [resolvable:$true] %s44_s6 }
  0x19   :  { %s520_s7 = scalar_lea.vmem %s45_s6, 2048  ;;  %p525_p11 = scmp.lt.s32.totalorder %s45_s6, %s45_s6 }
  0x1a   :  { %p521_p10 = scmp.ne.s32.totalorder %s45_s6, %s520_s7  ;;  %p526_p12 = scmp.lt.s32.totalorder %s520_s7, %s520_s7 }
  0x1c   :  { %p527_p13 = por %p526_p12, %p525_p11 }
  0x1e   :  { %p528_p0 = pnand %p527_p13, %p521_p10 }
  0x20   :  { %531 = shalt.err (!%p528_p0)
}
  0x21   :  { %50 = dma.hbm_to_vmem [thread:$0]  %s631_s3, 2048, %s45_s6, [#allocation8], %s560_s23, %s560_s23, %s561_s24  }
  0x22   :  { %552 = dma.done.wait [#allocation5], 512  }
  0x23   :  { %553 = vsyncadd [#allocation5], 4294966784 }
  0x24   :  { %554 = dma.done.wait [#allocation8], 2560  }
  0x25   :  { %555 = vsyncadd [#allocation8], 4294964736  ;;  %vm89_vm0 = vcmask 261120   ;;  %v81_v0 = vld [vmem:[#allocation7 + $0x18] sm:$0xff]  ;;  %v80_v1 = vld [vmem:[#allocation7 + $0x10] sm:$0xff]  ;;  %s563_s10 = smov [#allocation10]  }
  0x26   :  { %406 = vmatprep.subr.mxu0 %v81_v0  ;;  %v74_v2 = vld [vmem:[#allocation4] sm:$0xff]  ;;  %v79_v3 = vld [vmem:[#allocation7 + $0x8] sm:$0xff]  ;;  %v238_v4 = vld [vmem:[#allocation9 + $0x78] sm:$0xff]  ;;  %s359_s11 = sshll.u32 %s563_s10, 4  ;;  %s360_s11 = int_to_ptr.vmem [resolvable:$true] %s359_s11 }
  0x27   :  { %407 = vmatpush3.msra.mxu0 %v81_v0  ;;  %414 = vmatprep.mubr.msk.f32.mxu0 %vm89_vm0, %v74_v2  ;;  %v237_v5 = vld [vmem:[#allocation9 + $0x70] sm:$0xff]  ;;  %v78_v6 = vld [vmem:[#allocation7] sm:$0xff]  ;;  %v236_v7 = vld [vmem:[#allocation9 + $0x68] sm:$0xff]  ;;  %s532_s12 = scalar_lea.vmem %s360_s11, 512  ;;  %p537_p2 = scmp.lt.s32.totalorder %s360_s11, %s360_s11 }
  0x28   :  { %408 = vmatprep.subr.mxu0 %v80_v1  ;;  %420 = vmatprep.subr.mxu1 %v238_v4  ;;  %v75_v8 = vld [vmem:[#allocation4 + $0x8] sm:$0xff]  ;;  %v76_v9 = vld [vmem:[#allocation4 + $0x10] sm:$0xff]  ;;  %v77_v10 = vld [vmem:[#allocation4 + $0x18] sm:$0xff]  ;;  %p533_p1 = scmp.ne.s32.totalorder %s360_s11, %s532_s12  ;;  %p538_p3 = scmp.lt.s32.totalorder %s532_s12, %s532_s12 }
  0x29   :  { %409 = vmatpush3.msra.mxu0 %v80_v1  ;;  %421 = vmatpush3.msra.mxu1 %v238_v4  ;;  %v235_v11 = vld [vmem:[#allocation9 + $0x60] sm:$0xff]  ;;  %v234_v12 = vld [vmem:[#allocation9 + $0x58] sm:$0xff]  ;;  %v233_v13 = vld [vmem:[#allocation9 + $0x50] sm:$0xff] }
  0x2a   :  { %410 = vmatprep.subr.mxu0 %v79_v3  ;;  %422 = vmatprep.subr.mxu1 %v237_v5  ;;  %v232_v14 = vld [vmem:[#allocation9 + $0x48] sm:$0xff]  ;;  %v231_v15 = vld [vmem:[#allocation9 + $0x40] sm:$0xff]  ;;  %v230_v16 = vld [vmem:[#allocation9 + $0x38] sm:$0xff]  ;;  %p539_p4 = por %p538_p3, %p537_p2 }
  0x2b   :  { %411 = vmatpush3.msra.mxu0 %v79_v3  ;;  %423 = vmatpush3.msra.mxu1 %v237_v5  ;;  %v229_v17 = vld [vmem:[#allocation9 + $0x30] sm:$0xff]  ;;  %v228_v18 = vld [vmem:[#allocation9 + $0x28] sm:$0xff]  ;;  %v227_v19 = vld [vmem:[#allocation9 + $0x20] sm:$0xff] }
  0x2c   :  { %412 = vmatprep.subr.mxu0 %v78_v6  ;;  %424 = vmatprep.subr.mxu1 %v236_v7  ;;  %v226_v20 = vld [vmem:[#allocation9 + $0x18] sm:$0xff]  ;;  %v225_v21 = vld [vmem:[#allocation9 + $0x10] sm:$0xff]  ;;  %v224_v22 = vld [vmem:[#allocation9 + $0x8] sm:$0xff]  ;;  %p540_p5 = pnand %p539_p4, %p533_p1 }
  0x2d   :  { %413 = vmatpush3.msra.mxu0 %v78_v6  ;;  %425 = vmatpush3.msra.mxu1 %v236_v7  ;;  %v223_v23 = vld [vmem:[#allocation9] sm:$0xff] }
  0x2e   :  { %415 = vmatmul.mubr.msk.f32.vlgmr.msra.gmra.mxu0 %vm89_vm0, %v75_v8  ;;  %426 = vmatprep.subr.mxu1 %v235_v11  ;;  %v372_v24 = vld [vmem:[%s630_s2] ss:$0 sm:$0xff] }
  0x2f   :  { %417 = vmatprep.mubr.msk.f32.mxu0 %vm89_vm0, %v76_v9  ;;  %427 = vmatpush3.msra.mxu1 %v235_v11  ;;  %v377_v53 = vld [vmem:[%s632_s4] ss:$0 sm:$0xff] }
  0x30   :  { %428 = vmatprep.subr.mxu1 %v234_v12 }
  0x31   :  { %429 = vmatpush3.msra.mxu1 %v234_v12 }
  0x32   :  { %418 = vmatmul.mubr.msk.f32.gmra.mxu0 %vm89_vm0, %v77_v10  ;;  %430 = vmatprep.subr.mxu1 %v233_v13 }
  0x33   :  { %431 = vmatpush3.msra.mxu1 %v233_v13 }
  0x34   :  { %432 = vmatprep.subr.mxu1 %v232_v14 }
  0x35   :  { %433 = vmatpush3.msra.mxu1 %v232_v14 }
  0x36   :  { %434 = vmatprep.subr.mxu1 %v231_v15 }
  0x37   :  { %435 = vmatpush3.msra.mxu1 %v231_v15 }
  0x38   :  { %436 = vmatprep.subr.mxu1 %v230_v16 }
  0x39   :  { %437 = vmatpush3.msra.mxu1 %v230_v16 }
  0x3a   :  { %438 = vmatprep.subr.mxu1 %v229_v17 }
  0x3b   :  { %439 = vmatpush3.msra.mxu1 %v229_v17 }
  0x3c   :  { %440 = vmatprep.subr.mxu1 %v228_v18 }
  0x3d   :  { %441 = vmatpush3.msra.mxu1 %v228_v18 }
  0x3e   :  { %442 = vmatprep.subr.mxu1 %v227_v19 }
  0x3f   :  { %443 = vmatpush3.msra.mxu1 %v227_v19 }
  0x40   :  { %444 = vmatprep.subr.mxu1 %v226_v20 }
  0x41   :  { %445 = vmatpush3.msra.mxu1 %v226_v20 }
  0x42   :  { %446 = vmatprep.subr.mxu1 %v225_v21 }
  0x43   :  { %447 = vmatpush3.msra.mxu1 %v225_v21 }
  0x44   :  { %448 = vmatprep.subr.mxu1 %v224_v22 }
  0x45   :  { %449 = vmatpush3.msra.mxu1 %v224_v22 }
  0x46   :  { %450 = vmatprep.subr.mxu1 %v223_v23 }
  0x47   :  { %451 = vmatpush3.msra.mxu1 %v223_v23 }
  0xee   :  { %v416_v25 = vpop.f32.mrf.mxu0 }
  0xef   :  { %v174_v26 = vadd.f32 %v416_v25, %v372_v24 }
  0xf0   :  { %v168_v27 = vpop.f32.mrf.mxu0 }
  0xf1   :  { %v192_v28 = vmul.f32 0.70710677, %v174_v26  ;;  %v169_v29 = vadd.f32 %v372_v24, %v168_v27  ;;  %v188_v43 = vmul.f32 0.5, %v174_v26 }
  0xf2   :  { %v419_v30 = vpop.f32.mrf.mxu0 }
  0xf3   :  { %464 = verf.f32 %v192_v28  ;;  %v191_v31 = vmul.f32 0.70710677, %v169_v29  ;;  %v184_v32 = vadd.f32 %v419_v30, %v372_v24  ;;  %v187_v40 = vmul.f32 0.5, %v169_v29 }
  0xf4   :  { %v178_v33 = vpop.f32.mrf.mxu0 }
  0xf5   :  { %466 = verf.f32 %v191_v31  ;;  %v194_v34 = vmul.f32 0.70710677, %v184_v32  ;;  %v179_v35 = vadd.f32 %v372_v24, %v178_v33  ;;  %v190_v50 = vmul.f32 0.5, %v184_v32 }
  0xf7   :  { %468 = verf.f32 %v194_v34  ;;  %v193_v36 = vmul.f32 0.70710677, %v179_v35  ;;  %v189_v48 = vmul.f32 0.5, %v179_v35 }
  0xf9   :  { %470 = verf.f32 %v193_v36 }
 0x100   :  { %v465_v37 = vpop.eup %464 }
 0x101   :  { %v200_v39 = vadd.f32 1.0, %v465_v37 }
 0x102   :  { %v467_v38 = vpop.eup %466 }
 0x103   :  { %v199_v41 = vadd.f32 1.0, %v467_v38  ;;  %v204_v46 = vmul.f32 %v200_v39, %v188_v43 }
 0x104   :  { %v469_v42 = vpop.eup %468 }
 0x105   :  { %v203_v44 = vmul.f32 %v199_v41, %v187_v40  ;;  %v202_v47 = vadd.f32 1.0, %v469_v42 }
 0x106   :  { %v471_v45 = vpop.eup %470 }
 0x107   :  { %452 = vmatprep.mubr.f32.mxu1 %v203_v44  ;;  %v201_v49 = vadd.f32 1.0, %v471_v45  ;;  %v206_v52 = vmul.f32 %v202_v47, %v190_v50 }
 0x108   :  { %453 = vmatmul.mubr.f32.vlgmr.msra.gmra.mxu1 %v204_v46 }
 0x109   :  { %v205_v51 = vmul.f32 %v201_v49, %v189_v48 }
 0x10b   :  { %455 = vmatprep.mubr.f32.mxu1 %v205_v51 }
 0x10c   :  { %456 = vmatmul.mubr.f32.gmra.mxu1 %v206_v52 }
 0x1c8   :  { %v454_v54 = vpop.f32.mrf.mxu1 }
 0x1c9   :  { %v347_v55 = vadd.f32 %v454_v54, %v377_v53 }
 0x1ca   :  { %v305_v56 = vpop.f32.mrf.mxu1 }
 0x1cb   :  { %351 = vst [vmem:[#allocation10 + $0x8] sm:$0xff] %v347_v55  ;;  %v346_v57 = vadd.f32 %v377_v53, %v305_v56 }
 0x1cc   :  { %v457_v58 = vpop.f32.mrf.mxu1 }
 0x1cd   :  { %350 = vst [vmem:[#allocation10] sm:$0xff] %v346_v57  ;;  %v349_v59 = vadd.f32 %v457_v58, %v377_v53 }
 0x1ce   :  { %v315_v60 = vpop.f32.mrf.mxu1 }
 0x1cf   :  { %353 = vst [vmem:[#allocation10 + $0x18] sm:$0xff] %v349_v59  ;;  %v348_v61 = vadd.f32 %v377_v53, %v315_v60 }
 0x1d1   :  { %352 = vst [vmem:[#allocation10 + $0x10] sm:$0xff] %v348_v61 }
 0x1d2   :  { %543 = shalt.err (!%p540_p5)
}
 0x1d3   :  { %365 = dma.vmem_to_hbm [thread:$0]  %s360_s11, 512, %s633_s5, [#allocation6], %s560_s23, %s560_s23, %s561_s24  }
 0x1d4   :  { %556 = dma.done.wait [#allocation6], 512  }
 0x1d5   :  { %557 = vsyncadd [#allocation6], 4294966784 }
 0x1d6   :  { %369 = vsyncpa [#allocation5], 1 }
 0x1d7   :  { %370 = vsyncpa [#allocation8], 1 }
 0x1d8   :  { %371 = vsyncpa [#allocation6], 1 }

</bundles_post_ra>
